<compile_context>
chip_gen: v7x
topology: tpu7x:2x2x1
jax: 0.10.0
libtpu: 0.0.40
codegen_flags: <defaults>
</compile_context>

<pallas_src>
from functools import partial

import jax
import jax.numpy as jnp
from jax.experimental import pallas as pl
from jax.experimental.pallas import tpu as pltpu


MAX_BATCH_TILE = 2048  # lane-axis rows per grid step; activations << VMEM


def _device_kind():
    try:
        return jax.devices()[0].device_kind.lower()
    except Exception:  # pragma: no cover - backend query is best-effort
        return ""


_KIND = _device_kind()
# bf16 VALU exists on v6e / v7x; v5e (and older) should keep f32 pointwise.
_HAS_BF16_VALU = ("v6" in _KIND) or ("v7" in _KIND)
# Megacore (2 TensorCores sharing one Pallas call via "parallel" axes): v7x.
_NUM_TC = 2 if ("v7" in _KIND) else 1


def _round_up(x, m):
    return ((x + m - 1) // m) * m


def _actor_kernel(xT_ref, w1_ref, b1_ref, w2_ref, b2_ref, w3_ref, b3_ref,
                  o_ref, *, bf16_pointwise):
    """sigmoid(W3 @ relu(W2 @ relu(W1 @ xT + b1) + b2) + b3) for one batch tile.

    Batch sits on the lane (last) axis.  Weights/activations feed the MXU in
    bf16 with f32 accumulation; bias/ReLU run in bf16 on v6e/v7x, f32 on v5e;
    the final bias + sigmoid stay f32.
    """
    xT = xT_ref[...]                                              # (d_in, bt) bf16

    h1 = jnp.dot(w1_ref[...], xT, preferred_element_type=jnp.float32)   # (fc1, bt)
    if bf16_pointwise:
        h1 = jnp.maximum(h1.astype(jnp.bfloat16) + b1_ref[...], 0)
    else:
        h1 = jnp.maximum(h1 + b1_ref[...], 0.0).astype(jnp.bfloat16)

    h2 = jnp.dot(w2_ref[...], h1, preferred_element_type=jnp.float32)   # (fc2, bt)
    if bf16_pointwise:
        h2 = jnp.maximum(h2.astype(jnp.bfloat16) + b2_ref[...], 0)
    else:
        h2 = jnp.maximum(h2 + b2_ref[...], 0.0).astype(jnp.bfloat16)

    z = jnp.dot(w3_ref[...], h2, preferred_element_type=jnp.float32)    # (n_act, bt)
    o_ref[...] = jax.nn.sigmoid(z + b3_ref[...])


@jax.jit
def actor_forward(state, params):
    """state: (B, input_dims) f32.

    params (PyTorch layout): w* of shape (out, in) f32, b* of shape (out, 1) f32.
    Returns (B, n_actions) f32.
    """
    w1, b1 = params["w1"], params["b1"]
    w2, b2 = params["w2"], params["b2"]
    w3, b3 = params["w3"], params["b3"]

    B, d_in = state.shape
    fc1, fc2 = w1.shape[0], w2.shape[0]
    n_actions = w3.shape[0]

    # Batch-on-lanes: feed x^T and pad the batch (lane) axis to a multiple of
    # 128.  The pad fuses with the transpose/cast and keeps all blocks
    # lane-aligned; padded columns are sliced off after the call.
    B_run = _round_up(max(B, 1), 128)
    xT = jnp.pad(state.T.astype(jnp.bfloat16), ((0, 0), (0, B_run - B)))

    # Largest lane tile covering the batch (amortizes per-step grid overhead).
    batch_tile = min(B_run, MAX_BATCH_TILE)
    # Only force a 2-way split when the chip actually has 2 TensorCores (v7x)
    # and each half is large enough (>= 512 rows) to amortize a grid step.
    if _NUM_TC > 1 and B_run >= 1024 and pl.cdiv(B_run, batch_tile) < 2:
        batch_tile = _round_up(pl.cdiv(B_run, 2), 128)
    grid = (pl.cdiv(B_run, batch_tile),)

    # bf16 weights: single-pass MXU inputs and half the (tiny) DMA bytes.
    w1b = w1.astype(jnp.bfloat16)
    w2b = w2.astype(jnp.bfloat16)
    w3b = w3.astype(jnp.bfloat16)
    if _HAS_BF16_VALU:
        b1k, b2k = b1.astype(jnp.bfloat16), b2.astype(jnp.bfloat16)
    else:
        b1k, b2k = b1, b2
    b3k = b3  # final layer bias + sigmoid stay f32

    flops = 2 * B_run * (d_in * fc1 + fc1 * fc2 + fc2 * n_actions)
    bytes_accessed = (
        xT.size * 2
        + (w1b.size + w2b.size + w3b.size) * 2
        + (b1.size + b2.size + b3.size) * 4
        + B_run * n_actions * 4
    )
    cost = pl.CostEstimate(
        flops=flops,
        transcendentals=B_run * n_actions,   # sigmoid exp on the EUP
        bytes_accessed=bytes_accessed,
    )

    outT = pl.pallas_call(
        partial(_actor_kernel, bf16_pointwise=_HAS_BF16_VALU),
        out_shape=jax.ShapeDtypeStruct((n_actions, B_run), jnp.float32),
        grid=grid,
        in_specs=[
            # x^T: tiled over the batch (lane) axis only.
            pl.BlockSpec((d_in, batch_tile), lambda i: (0, i)),
            # weights / biases: full arrays, constant index -> VMEM-resident.
            pl.BlockSpec(w1b.shape, lambda i: (0, 0)),
            pl.BlockSpec(b1k.shape, lambda i: (0, 0)),
            pl.BlockSpec(w2b.shape, lambda i: (0, 0)),
            pl.BlockSpec(b2k.shape, lambda i: (0, 0)),
            pl.BlockSpec(w3b.shape, lambda i: (0, 0)),
            pl.BlockSpec(b3k.shape, lambda i: (0, 0)),
        ],
        out_specs=pl.BlockSpec((n_actions, batch_tile), lambda i: (0, i)),
        compiler_params=pltpu.CompilerParams(
            dimension_semantics=("parallel",),
        ),
        cost_estimate=cost,
    )(xT, w1b, b1k, w2b, b2k, w3b, b3k)

    return outT[:, :B].T


def init_actor_params(key, input_dims, fc1_dims, fc2_dims, n_actions):
    """Deterministic init mirroring ActorNetwork._init_layer.

    PyTorch stores Linear weights as (out, in); the module's _init_layer uses
    limit = scale / sqrt(weight.size(0)) = scale / sqrt(out_dims).  We keep
    the native (out, in) layout (kernel computes W @ x^T); biases are (out, 1).
    """
    def layer(k, d_in, d_out, scale):
        kw, kb = jax.random.split(k)
        limit = scale / jnp.sqrt(jnp.float32(d_out))
        w = jax.random.uniform(kw, (d_out, d_in), jnp.float32, -limit, limit)
        b = jax.random.uniform(kb, (d_out, 1), jnp.float32, -limit, limit)
        return w, b

    k1, k2, k3 = jax.random.split(key, 3)
    w1, b1 = layer(k1, input_dims, fc1_dims, 1.0)
    w2, b2 = layer(k2, fc1_dims, fc2_dims, 1.0)
    w3, b3 = layer(k3, fc2_dims, n_actions, 0.003)
    return {"w1": w1, "b1": b1, "w2": w2, "b2": b2, "w3": w3, "b3": b3}


def actor_forward_ref(state, params):
    """Pure-JAX f32 reference for correctness check."""
    h1 = jax.nn.relu(state @ params["w1"].T + params["b1"].T)
    h2 = jax.nn.relu(h1 @ params["w2"].T + params["b2"].T)
    return jax.nn.sigmoid(h2 @ params["w3"].T + params["b3"].T)


# TODO(synk): Adam optimizer step and checkpoint save/load from the PyTorch
# module are training/IO concerns and are not translated (forward-pass only).
# TODO(synk): for the production per-agent B=2 path, batch several agents /
# timesteps into a single actor_forward call — at B=2 wall clock is dominated
# by dispatch + grid-step overhead, not by anything inside the kernel.


if __name__ == "__main__":
    # Shapes consistent with the module: batch=2 agents' observations,
    # input_dims=16, fc1_dims=32, fc2_dims=32, n_actions=4.
    B, input_dims, fc1_dims, fc2_dims, n_actions = 2, 16, 32, 32, 4

    key = jax.random.PRNGKey(0)
    k_params, k_state, k_state2, k_state3 = jax.random.split(key, 4)

    params = init_actor_params(k_params, input_dims, fc1_dims, fc2_dims, n_actions)

    # Small case (batch padded 2 -> 128 lanes internally).
    state = jax.random.normal(k_state, (B, input_dims), jnp.float32)
    out = jax.block_until_ready(actor_forward(state, params))
    ref = actor_forward_ref(state, params)
    assert out.shape == (B, n_actions), out.shape
    # bf16 matmul inputs with f32 accumulation -> loosened tolerance.
    assert jnp.allclose(out, ref, atol=1e-2, rtol=1e-2), "mismatch vs reference (B=2)"

    # Medium batch: non-multiple-of-128 batch, single grid step.
    B2 = 100
    state2 = jax.random.normal(k_state2, (B2, input_dims), jnp.float32)
    out2 = jax.block_until_ready(actor_forward(state2, params))
    ref2 = actor_forward_ref(state2, params)
    assert out2.shape == (B2, n_actions), out2.shape
    assert jnp.allclose(out2, ref2, atol=1e-2, rtol=1e-2), "mismatch vs reference (B=100)"

    # Larger batch: exercises the multi-step grid + ragged last block path.
    B3 = 2500
    state3 = jax.random.normal(k_state3, (B3, input_dims), jnp.float32)
    out3 = jax.block_until_ready(actor_forward(state3, params))
    ref3 = actor_forward_ref(state3, params)
    assert out3.shape == (B3, n_actions), out3.shape
    assert jnp.allclose(out3, ref3, atol=1e-2, rtol=1e-2), "mismatch vs reference (B=2500)"

    print("KERNEL_OK")
</pallas_src>

<mosaic_0001>
module attributes {stable_mosaic.version = 11 : i64} {
  func.func @_actor_kernel(%arg0: i32, %arg1: memref<16x128xbf16, #tpu.memory_space<vmem>>, %arg2: memref<32x16xbf16, #tpu.memory_space<vmem>>, %arg3: memref<32x1xf32, #tpu.memory_space<vmem>>, %arg4: memref<32x32xbf16, #tpu.memory_space<vmem>>, %arg5: memref<32x1xf32, #tpu.memory_space<vmem>>, %arg6: memref<4x32xbf16, #tpu.memory_space<vmem>>, %arg7: memref<4x1xf32, #tpu.memory_space<vmem>>, %arg8: memref<4x128xf32, #tpu.memory_space<vmem>>) attributes {dimension_semantics = [#tpu.dimension_semantics<parallel>], iteration_bounds = array<i64: 1>, scalar_prefetch = 0 : i64, scratch_operands = 0 : i64, tpu.core_type = #tpu.core_type<tc>, window_params = [{transform_indices = @transform_0, window_bounds = array<i64: 16, 128>}, {pipeline_mode = #tpu.pipeline_mode<synchronous>, transform_indices = @transform_1, window_bounds = array<i64: 32, 16>}, {pipeline_mode = #tpu.pipeline_mode<synchronous>, transform_indices = @transform_2, window_bounds = array<i64: 32, 1>}, {pipeline_mode = #tpu.pipeline_mode<synchronous>, transform_indices = @transform_3, window_bounds = array<i64: 32, 32>}, {pipeline_mode = #tpu.pipeline_mode<synchronous>, transform_indices = @transform_4, window_bounds = array<i64: 32, 1>}, {pipeline_mode = #tpu.pipeline_mode<synchronous>, transform_indices = @transform_5, window_bounds = array<i64: 4, 32>}, {pipeline_mode = #tpu.pipeline_mode<synchronous>, transform_indices = @transform_6, window_bounds = array<i64: 4, 1>}, {transform_indices = @transform_7, window_bounds = array<i64: 4, 128>}]} {
    %c0 = arith.constant 0 : index
    %c0_0 = arith.constant 0 : index
    %0 = vector.load %arg1[%c0, %c0_0] : memref<16x128xbf16, #tpu.memory_space<vmem>>, vector<16x128xbf16>
    %c0_1 = arith.constant 0 : index
    %c0_2 = arith.constant 0 : index
    %1 = vector.load %arg2[%c0_1, %c0_2] : memref<32x16xbf16, #tpu.memory_space<vmem>>, vector<32x16xbf16>
    %cst = arith.constant dense<0.000000e+00> : vector<32x128xf32>
    %2 = tpu.matmul %1, %0, %cst {dimension_numbers = #tpu.dot_dimension_numbers<[1], [0], [0], [1], [0, 0, 1, 1], [], []>} : vector<32x16xbf16>, vector<16x128xbf16>, vector<32x128xf32> -> vector<32x128xf32>
    %c0_3 = arith.constant 0 : index
    %c0_4 = arith.constant 0 : index
    %3 = vector.load %arg3[%c0_3, %c0_4] : memref<32x1xf32, #tpu.memory_space<vmem>>, vector<32x1xf32>
    %4 = vector.broadcast %3 : vector<32x1xf32> to vector<32x128xf32>
    %5 = arith.addf %2, %4 : vector<32x128xf32>
    %cst_5 = arith.constant 0.000000e+00 : f32
    %6 = vector.broadcast %cst_5 : f32 to vector<32x128xf32>
    %7 = arith.maximumf %5, %6 : vector<32x128xf32>
    %8 = arith.truncf %7 : vector<32x128xf32> to vector<32x128xbf16>
    %c0_6 = arith.constant 0 : index
    %c0_7 = arith.constant 0 : index
    %9 = vector.load %arg4[%c0_6, %c0_7] : memref<32x32xbf16, #tpu.memory_space<vmem>>, vector<32x32xbf16>
    %cst_8 = arith.constant dense<0.000000e+00> : vector<32x128xf32>
    %10 = tpu.matmul %9, %8, %cst_8 {dimension_numbers = #tpu.dot_dimension_numbers<[1], [0], [0], [1], [0, 0, 1, 1], [], []>} : vector<32x32xbf16>, vector<32x128xbf16>, vector<32x128xf32> -> vector<32x128xf32>
    %c0_9 = arith.constant 0 : index
    %c0_10 = arith.constant 0 : index
    %11 = vector.load %arg5[%c0_9, %c0_10] : memref<32x1xf32, #tpu.memory_space<vmem>>, vector<32x1xf32>
    %12 = vector.broadcast %11 : vector<32x1xf32> to vector<32x128xf32>
    %13 = arith.addf %10, %12 : vector<32x128xf32>
    %cst_11 = arith.constant 0.000000e+00 : f32
    %14 = vector.broadcast %cst_11 : f32 to vector<32x128xf32>
    %15 = arith.maximumf %13, %14 : vector<32x128xf32>
    %16 = arith.truncf %15 : vector<32x128xf32> to vector<32x128xbf16>
    %c0_12 = arith.constant 0 : index
    %c0_13 = arith.constant 0 : index
    %17 = vector.load %arg6[%c0_12, %c0_13] : memref<4x32xbf16, #tpu.memory_space<vmem>>, vector<4x32xbf16>
    %cst_14 = arith.constant dense<0.000000e+00> : vector<4x128xf32>
    %18 = tpu.matmul %17, %16, %cst_14 {dimension_numbers = #tpu.dot_dimension_numbers<[1], [0], [0], [1], [0, 0, 1, 1], [], []>} : vector<4x32xbf16>, vector<32x128xbf16>, vector<4x128xf32> -> vector<4x128xf32>
    %c0_15 = arith.constant 0 : index
    %c0_16 = arith.constant 0 : index
    %19 = vector.load %arg7[%c0_15, %c0_16] : memref<4x1xf32, #tpu.memory_space<vmem>>, vector<4x1xf32>
    %20 = vector.broadcast %19 : vector<4x1xf32> to vector<4x128xf32>
    %21 = arith.addf %18, %20 : vector<4x128xf32>
    %22 = arith.negf %21 : vector<4x128xf32>
    %23 = math.exp %22 : vector<4x128xf32>
    %cst_17 = arith.constant 1.000000e+00 : f32
    %24 = vector.broadcast %cst_17 : f32 to vector<4x128xf32>
    %25 = arith.addf %24, %23 : vector<4x128xf32>
    %26 = arith.divf %24, %25 : vector<4x128xf32>
    %c0_18 = arith.constant 0 : index
    %c0_19 = arith.constant 0 : index
    %27 = vector.load %arg8[%c0_18, %c0_19] : memref<4x128xf32, #tpu.memory_space<vmem>>, vector<4x128xf32>
    tpu.vector_store %arg8[%c0_18, %c0_19], %26 {strides = array<i32>} : memref<4x128xf32, #tpu.memory_space<vmem>>, vector<4x128xf32>,
    return
  }
  func.func @transform_0(%arg0: i32) -> (i32, i32) {
    %c0_i32 = arith.constant 0 : i32
    %c0_i32_0 = arith.constant 0 : i32
    return %c0_i32, %arg0 : i32, i32
  }
  func.func @transform_1(%arg0: i32) -> (i32, i32) {
    %c0_i32 = arith.constant 0 : i32
    %c0_i32_0 = arith.constant 0 : i32
    %c0_i32_1 = arith.constant 0 : i32
    return %c0_i32, %c0_i32_0 : i32, i32
  }
  func.func @transform_2(%arg0: i32) -> (i32, i32) {
    %c0_i32 = arith.constant 0 : i32
    %c0_i32_0 = arith.constant 0 : i32
    %c0_i32_1 = arith.constant 0 : i32
    return %c0_i32, %c0_i32_0 : i32, i32
  }
  func.func @transform_3(%arg0: i32) -> (i32, i32) {
    %c0_i32 = arith.constant 0 : i32
    %c0_i32_0 = arith.constant 0 : i32
    %c0_i32_1 = arith.constant 0 : i32
    return %c0_i32, %c0_i32_0 : i32, i32
  }
  func.func @transform_4(%arg0: i32) -> (i32, i32) {
    %c0_i32 = arith.constant 0 : i32
    %c0_i32_0 = arith.constant 0 : i32
    %c0_i32_1 = arith.constant 0 : i32
    return %c0_i32, %c0_i32_0 : i32, i32
  }
  func.func @transform_5(%arg0: i32) -> (i32, i32) {
    %c0_i32 = arith.constant 0 : i32
    %c0_i32_0 = arith.constant 0 : i32
    %c0_i32_1 = arith.constant 0 : i32
    return %c0_i32, %c0_i32_0 : i32, i32
  }
  func.func @transform_6(%arg0: i32) -> (i32, i32) {
    %c0_i32 = arith.constant 0 : i32
    %c0_i32_0 = arith.constant 0 : i32
    %c0_i32_1 = arith.constant 0 : i32
    return %c0_i32, %c0_i32_0 : i32, i32
  }
  func.func @transform_7(%arg0: i32) -> (i32, i32) {
    %c0_i32 = arith.constant 0 : i32
    %c0_i32_0 = arith.constant 0 : i32
    return %c0_i32, %arg0 : i32, i32
  }
}

</mosaic_0001>

<bundles_post_ra>
// kernel: actor_forward.1
= control target key start
LH: loop header
LB: loop body
LE: loop exit
PB: predicated region body
PF: predicated region fallthrough
CT: control target
= control target key end

     0   :  { %vm73_vm0 = vcmask 130048   ;;  %v353_v1 = vmov 0   ;;  %vm173_vm1 = vcmask 261120   ;;  %v354_v33 = vmov 0.0   ;;  %s449_s0 = inlined_call_operand.vmem [shape: bf16[16,128], index: 0, kind: input, shape index: {}]   ;;  %s450_s1 = inlined_call_operand.vmem [shape: bf16[32,16], index: 1, kind: input, shape index: {}]   ;;  %s451_s2 = inlined_call_operand.vmem [shape: f32[32,1], index: 2, kind: input, shape index: {}]   ;;  %s452_s4 = inlined_call_operand.vmem [shape: f32[32,1], index: 4, kind: input, shape index: {}]   ;;  %s453_s6 = inlined_call_operand.vmem [shape: f32[4,1], index: 6, kind: input, shape index: {}]   ;;  %s454_s3 = inlined_call_operand.vmem [shape: bf16[32,32], index: 3, kind: input, shape index: {}]   ;;  %s455_s5 = inlined_call_operand.vmem [shape: bf16[4,32], index: 5, kind: input, shape index: {}]   ;;  %s456_s7 = inlined_call_operand.vmem [shape: f32[4,128], index: 7, kind: output, shape index: {}]  }
   0x1   :  { %v344_v0 = vld [vmem:[%s449_s0] sm:$0xff]   ;;  %342 = vset.pattern.permute.xlu0 %v353_v1  ;;  %343 = vset.pattern.permute.xlu1 %v353_v1  ;;  %v346_v3 = vld [vmem:[%s450_s1 + $0x8] sm:$0xff]   ;;  %v35_v5 = vld [vmem:[%s451_s2 + $0x10] sm:$0xff]  ;;  %vm355_vm2 = vmmov 0  }
   0x2   :  { %v345_v2 = vld [vmem:[%s450_s1] sm:$0xff]   ;;  %317 = vmatprep.subr.bf16.mxu0 %v344_v0  ;;  %49 = vperm.xlu1 %343, %v35_v5   ;;  %v34_v6 = vld [vmem:[%s451_s2 + $0x8] sm:$0xff]  ;;  %v36_v7 = vld [vmem:[%s451_s2 + $0x18] sm:$0xff] }
   0x3   :  { %318 = vmatpush3.bf16.msra.mxu0 %v344_v0  ;;  %319 = vmatprep.mubr.msk.bf16.mxu0 %vm73_vm0, %v345_v2  ;;  %v33_v4 = vld [vmem:[%s451_s2] sm:$0xff]  ;;  %v140_v9 = vld [vmem:[%s452_s4 + $0x8] sm:$0xff]  ;;  %v141_v10 = vld [vmem:[%s452_s4 + $0x10] sm:$0xff] }
   0x4   :  { %39 = vperm.xlu0 %342, %v33_v4   ;;  %v139_v8 = vld [vmem:[%s452_s4] sm:$0xff]  ;;  %v142_v11 = vld [vmem:[%s452_s4 + $0x18] sm:$0xff]  ;;  %v348_v32 = vld [vmem:[%s454_s3 + $0x8] sm:$0xff]   ;;  %331 = vmatprep.subr.bf16.mxu0 %v354_v33 }
   0x5   :  { %v236_v12 = vld [vmem:[%s453_s6] sm:$0xf] }
   0x6   :  { %320 = vmatmul.mubr.msk.bf16.vlgmr.msra.gmra.mrb[0].mxu0 %vm73_vm0, %v346_v3  ;;  %54 = vperm.xlu1 %343, %v36_v7   ;;  %v347_v13 = vld [vmem:[%s454_s3] sm:$0xff]  }
   0x7   :  { %327 = vmatprep.mubr.msk.bf16.mxu1 %vm173_vm1, %v347_v13  ;;  %335 = vmatprep.mubr.msk.bf16.mxu0 %vm355_vm2, %v354_v33  ;;  %v235_v52 = vld [vmem:[%s455_s5] sm:$0x3] }
   0x8   :  { %44 = vperm.xlu0 %342, %v34_v6  }
   0xa   :  { %150 = vperm.xlu1 %343, %v140_v9  }
   0xc   :  { %145 = vperm.xlu0 %342, %v139_v8  }
   0xe   :  { %160 = vperm.xlu1 %343, %v142_v11  }
  0x10   :  { %155 = vperm.xlu0 %342, %v141_v10  }
  0x14   :  { %239 = vperm.xlu0 %342, %v236_v12  }
  0x81   :  { %v50_v14 = vpop.permute.xlu1 %49 }
  0x83   :  { %v40_v15 = vpop.permute.xlu0 %39 }
  0x85   :  { %v55_v19 = vpop.permute.xlu1 %54 }
  0x87   :  { %v45_v22 = vpop.permute.xlu0 %44 }
  0x89   :  { %v151_v35 = vpop.permute.xlu1 %150 }
  0x8b   :  { %v146_v34 = vpop.permute.xlu0 %145 }
  0x8d   :  { %v161_v40 = vpop.permute.xlu1 %160 }
  0x8f   :  { %v156_v36 = vpop.permute.xlu0 %155 }
  0x93   :  { %v240_v53 = vpop.permute.xlu0 %239 }
  0xd9   :  { %v321_v16 = vpop.f32.mrb[0].mxu0 }
  0xda   :  { %v123_v17 = vadd.f32 %v321_v16, %v50_v14  ;;  %v114_v18 = vpop.f32.mrb[1].mxu0 }
  0xdb   :  { %v115_v20 = vadd.f32 %v114_v18, %v40_v15  ;;  %v322_v21 = vpop.f32.mrb[2].mxu0 }
  0xdc   :  { %v126_v23 = vadd.f32 %v322_v21, %v55_v19  ;;  %v117_v24 = vpop.f32.mrb[3].mxu0  ;;  %v131_v26 = vmax.f32 %v123_v17, 0.0 }
  0xdd   :  { %v118_v25 = vadd.f32 %v117_v24, %v45_v22  ;;  %v129_v28 = vmax.f32 %v115_v20, 0.0 }
  0xde   :  { %v132_v27 = vmax.f32 %v126_v23, 0.0 }
  0xdf   :  { %v130_v29 = vmax.f32 %v118_v25, 0.0 }
  0xe0   :  { %v134_v30 = vpack.c.bf16 %v132_v27, %v131_v26 }
  0xe1   :  { %v133_v31 = vpack.c.bf16 %v130_v29, %v129_v28 }
  0xe3   :  { %323 = vmatprep.subr.bf16.mxu1 %v133_v31 }
  0xe4   :  { %324 = vmatpush3.bf16.msra.mxu1 %v133_v31 }
  0xe5   :  { %325 = vmatprep.subr.bf16.mxu1 %v134_v30 }
  0xe8   :  { %326 = vmatpush3.bf16.msra.mxu1 %v134_v30 }
  0xeb   :  { %328 = vmatmul.mubr.msk.bf16.vlgmr.msra.gmra.mrb[0].mxu1 %vm173_vm1, %v348_v32 }
 0x1be   :  { %v329_v37 = vpop.f32.mrb[0].mxu1 }
 0x1bf   :  { %v223_v38 = vadd.f32 %v329_v37, %v156_v36  ;;  %v214_v39 = vpop.f32.mrb[1].mxu1 }
 0x1c0   :  { %v215_v41 = vadd.f32 %v214_v39, %v146_v34  ;;  %v330_v42 = vpop.f32.mrb[2].mxu1 }
 0x1c1   :  { %v226_v43 = vadd.f32 %v330_v42, %v161_v40  ;;  %v217_v44 = vpop.f32.mrb[3].mxu1  ;;  %v231_v46 = vmax.f32 %v223_v38, 0.0 }
 0x1c2   :  { %v218_v45 = vadd.f32 %v217_v44, %v151_v35  ;;  %v229_v48 = vmax.f32 %v215_v41, 0.0 }
 0x1c3   :  { %v232_v47 = vmax.f32 %v226_v43, 0.0 }
 0x1c4   :  { %v230_v49 = vmax.f32 %v218_v45, 0.0 }
 0x1c5   :  { %v234_v50 = vpack.c.bf16 %v232_v47, %v231_v46 }
 0x1c6   :  { %v233_v51 = vpack.c.bf16 %v230_v49, %v229_v48 }
 0x1c8   :  { %332 = vmatpush3.bf16.msra.mxu0 %v233_v51 }
 0x1c9   :  { %333 = vmatprep.subr.bf16.mxu0 %v354_v33 }
 0x1cc   :  { %334 = vmatpush3.bf16.msra.mxu0 %v234_v50 }
 0x1cf   :  { %336 = vmatmul.mubr.msk.bf16.vlgmr.msra.gmra.mrb[4].mxu0 %vm173_vm1, %v235_v52 }
 0x2a2   :  { %v279_v54 = vpop.f32.mrb[4].mxu0 }
 0x2a3   :  { %v280_v55 = vadd.f32 %v279_v54, %v240_v53  ;;  %v337_v56 = vpop.f32.mrb[5].mxu0 }
 0x2a4   :  { %v282_v57 = vpop.f32.mrb[6].mxu0 }
 0x2a5   :  { %v306_v58 = vmul.f32 -1.442695, %v280_v55  ;;  %v338_v59 = vpop.f32.mrb[7].mxu0 }
 0x2a7   :  { %349 = vpow2.f32 %v306_v58 }
 0x2b1   :  { %v350_v60 = vpop.eup %349 }
 0x2b2   :  { %v288_v61 = vadd.f32 1.0, %v350_v60 }
 0x2b4   :  { %351 = vrcp.f32 %v288_v61 }
 0x2be   :  { %v352_v62 = vpop.eup %351 }
 0x2bf   :  { %291 = vst [vmem:[%s456_s7] sm:$0xf] %v352_v62 }

</bundles_post_ra>
